<compile_context>
chip_gen: v5e
topology: v5e:2x2
jax: 0.10.0
libtpu: 0.0.40
codegen_flags: <defaults>
</compile_context>

<pallas_src>
import jax
import jax.numpy as jnp
from jax.experimental import pallas as pl
from jax.experimental.pallas import tpu as pltpu


def _round_up(x, m):
    return ((x + m - 1) // m) * m


def _policy_kernel(obs_ref, w1_ref, b1_ref, w2_ref, b2_ref, w3_ref, b3_ref,
                   out_ref):
    # bf16 cast on the VPU (in-kernel, no wrapper-side cast / extra HBM trip);
    # MXU matmuls accumulate in f32; bias/relu/tanh stay f32 (safe on v5e,
    # fine on v6e/v7x at these block sizes).
    x = obs_ref[...].astype(w1_ref.dtype)

    h = jnp.dot(x, w1_ref[...], preferred_element_type=jnp.float32)
    h = jnp.maximum(h + b1_ref[...], 0.0)

    h = jnp.dot(h.astype(w2_ref.dtype), w2_ref[...],
                preferred_element_type=jnp.float32)
    h = jnp.maximum(h + b2_ref[...], 0.0)

    h = jnp.dot(h.astype(w3_ref.dtype), w3_ref[...],
                preferred_element_type=jnp.float32)
    out_ref[...] = jnp.tanh(h + b3_ref[...]).astype(out_ref.dtype)


def prepare_params(params, compute_dtype=jnp.bfloat16):
    """One-time conversion of PyTorch-convention params:
       - transpose weights to (in, out),
       - zero-pad the action (output lane) dim to a multiple of 128 so the
         final store is lane-dense (unmasked vst),
       - cast weights to the MXU compute dtype (bf16); biases stay f32.
    Returns (kernel_params, meta)."""
    hidden, obs_dim = params["w1"].shape
    action_dim = params["w3"].shape[0]
    act_pad = _round_up(action_dim, 128)

    w1 = params["w1"].T.astype(compute_dtype)                  # (obs_dim, hidden)
    w2 = params["w2"].T.astype(compute_dtype)                  # (hidden, hidden)
    w3 = jnp.zeros((hidden, act_pad), compute_dtype)
    w3 = w3.at[:, :action_dim].set(params["w3"].T.astype(compute_dtype))

    b1 = params["b1"].reshape(1, hidden).astype(jnp.float32)
    b2 = params["b2"].reshape(1, hidden).astype(jnp.float32)
    b3 = jnp.zeros((1, act_pad), jnp.float32)
    b3 = b3.at[:, :action_dim].set(
        params["b3"].reshape(1, action_dim).astype(jnp.float32))

    kparams = {"w1": w1, "b1": b1, "w2": w2, "b2": b2, "w3": w3, "b3": b3}
    meta = {"obs_dim": obs_dim, "hidden": hidden,
            "action_dim": action_dim, "act_pad": act_pad}
    return kparams, meta


def deterministic_policy_forward(obs, kparams, meta, *, block_b=None,
                                 out_dtype=jnp.float32):
    """obs: (B, obs_dim) f32 (or bf16).  kparams/meta: from prepare_params.

    Note: this kernel is launch/DMA-bound (not compute-bound) at small B —
    batch environments/timesteps into one call where possible.
    """
    B, obs_dim = obs.shape
    assert obs_dim == meta["obs_dim"]
    hidden = meta["hidden"]
    action_dim, act_pad = meta["action_dim"], meta["act_pad"]

    if block_b is None:
        # Small B: a single full-extent block (legal for any B because the
        # block equals the full array dim) -> no batch padding, no waste.
        # Large B: 256-row tiles so the batch grid has >= 2 steps and the
        # "parallel" axis can shard across v7x's two TensorCores.
        block_b = B if B <= 256 else 256

    B_pad = _round_up(B, block_b)
    obs_in = obs if B_pad == B else jnp.pad(obs, ((0, B_pad - B), (0, 0)))

    # Constant-index weight blocks never change across grid steps; once they
    # are big, single-buffer them (the 2nd pipeline buffer is pure VMEM waste
    # and breaks v7x's 64 MiB VMEM first as hidden grows).
    weight_bytes = 2 * hidden * (obs_dim + hidden + act_pad)   # bf16
    single_buffer_weights = weight_bytes > (8 << 20)

    def const(shape):
        if single_buffer_weights:
            return pl.BlockSpec(shape, lambda i: (0, 0),
                                pipeline_mode=pl.Buffered(1))
        return pl.BlockSpec(shape, lambda i: (0, 0))

    out = pl.pallas_call(
        _policy_kernel,
        out_shape=jax.ShapeDtypeStruct((B_pad, act_pad), out_dtype),
        grid=(B_pad // block_b,),
        in_specs=[
            pl.BlockSpec((block_b, obs_dim), lambda i: (i, 0)),
            const((obs_dim, hidden)),   # weights/biases: constant index maps,
            const((1, hidden)),         # stay resident in VMEM across steps.
            const((hidden, hidden)),
            const((1, hidden)),
            const((hidden, act_pad)),
            const((1, act_pad)),
        ],
        out_specs=pl.BlockSpec((block_b, act_pad), lambda i: (i, 0)),
        compiler_params=pltpu.CompilerParams(
            dimension_semantics=("parallel",)),
    )(obs_in, kparams["w1"], kparams["b1"], kparams["w2"], kparams["b2"],
      kparams["w3"], kparams["b3"])

    return out[:B, :action_dim]


def init_params(key, obs_dim, action_dim, hidden_size):
    """Deterministic synthetic init mimicking nn.Linear's uniform(-1/sqrt(fan_in))."""
    ks = jax.random.split(key, 6)

    def lin(kw, kb, fan_in, fan_out):
        bound = 1.0 / jnp.sqrt(fan_in)
        w = jax.random.uniform(kw, (fan_out, fan_in), jnp.float32, -bound, bound)
        b = jax.random.uniform(kb, (fan_out,), jnp.float32, -bound, bound)
        return w, b

    w1, b1 = lin(ks[0], ks[1], obs_dim, hidden_size)
    w2, b2 = lin(ks[2], ks[3], hidden_size, hidden_size)
    w3, b3 = lin(ks[4], ks[5], hidden_size, action_dim)
    return {"w1": w1, "b1": b1, "w2": w2, "b2": b2, "w3": w3, "b3": b3}


def _reference(obs, params):
    h = jnp.maximum(obs @ params["w1"].T + params["b1"], 0.0)
    h = jnp.maximum(h @ params["w2"].T + params["b2"], 0.0)
    return jnp.tanh(h @ params["w3"].T + params["b3"])


if __name__ == "__main__":
    key = jax.random.PRNGKey(0)
    k_obs, k_obs2, k_params = jax.random.split(key, 3)

    obs_dim, action_dim, hidden_size = 32, 8, 128
    params = init_params(k_params, obs_dim, action_dim, hidden_size)

    # One-time param prep (transpose / lane-pad / bf16 cast) — out of the
    # per-call path.
    kparams, meta = prepare_params(params)

    # Small batch: single full-extent block, no obs padding, no wasted rows.
    obs_small = jax.random.normal(k_obs, (8, obs_dim), dtype=jnp.float32)
    out_small = jax.block_until_ready(
        deterministic_policy_forward(obs_small, kparams, meta))
    ref_small = _reference(obs_small, params)
    assert out_small.shape == (8, action_dim)
    assert jnp.allclose(out_small, ref_small, atol=5e-2, rtol=5e-2), (
        f"max abs err {jnp.max(jnp.abs(out_small - ref_small))}")

    # Larger batch: exercises the tiled path (multi-step "parallel" grid for
    # v7x megacore sharding, single jnp.pad of the ragged batch tail).
    obs_big = jax.random.normal(k_obs2, (300, obs_dim), dtype=jnp.float32)
    out_big = jax.block_until_ready(
        deterministic_policy_forward(obs_big, kparams, meta))
    ref_big = _reference(obs_big, params)
    assert out_big.shape == (300, action_dim)
    assert jnp.allclose(out_big, ref_big, atol=5e-2, rtol=5e-2), (
        f"max abs err {jnp.max(jnp.abs(out_big - ref_big))}")

    print("KERNEL_OK")
</pallas_src>

<mosaic_0001>
module attributes {stable_mosaic.version = 11 : i64} {
  func.func @_policy_kernel(%arg0: i32, %arg1: memref<8x32xf32, #tpu.memory_space<vmem>>, %arg2: memref<32x128xbf16, #tpu.memory_space<vmem>>, %arg3: memref<1x128xf32, #tpu.memory_space<vmem>>, %arg4: memref<128x128xbf16, #tpu.memory_space<vmem>>, %arg5: memref<1x128xf32, #tpu.memory_space<vmem>>, %arg6: memref<128x128xbf16, #tpu.memory_space<vmem>>, %arg7: memref<1x128xf32, #tpu.memory_space<vmem>>, %arg8: memref<8x128xf32, #tpu.memory_space<vmem>>) attributes {dimension_semantics = [#tpu.dimension_semantics<parallel>], iteration_bounds = array<i64: 1>, scalar_prefetch = 0 : i64, scratch_operands = 0 : i64, tpu.core_type = #tpu.core_type<tc>, window_params = [{transform_indices = @transform_0, window_bounds = array<i64: 8, 32>}, {pipeline_mode = #tpu.pipeline_mode<synchronous>, transform_indices = @transform_1, window_bounds = array<i64: 32, 128>}, {pipeline_mode = #tpu.pipeline_mode<synchronous>, transform_indices = @transform_2, window_bounds = array<i64: 1, 128>}, {pipeline_mode = #tpu.pipeline_mode<synchronous>, transform_indices = @transform_3, window_bounds = array<i64: 128, 128>}, {pipeline_mode = #tpu.pipeline_mode<synchronous>, transform_indices = @transform_4, window_bounds = array<i64: 1, 128>}, {pipeline_mode = #tpu.pipeline_mode<synchronous>, transform_indices = @transform_5, window_bounds = array<i64: 128, 128>}, {pipeline_mode = #tpu.pipeline_mode<synchronous>, transform_indices = @transform_6, window_bounds = array<i64: 1, 128>}, {transform_indices = @transform_7, window_bounds = array<i64: 8, 128>}]} {
    %c0 = arith.constant 0 : index
    %c0_0 = arith.constant 0 : index
    %0 = vector.load %arg1[%c0, %c0_0] : memref<8x32xf32, #tpu.memory_space<vmem>>, vector<8x32xf32>
    %1 = arith.truncf %0 : vector<8x32xf32> to vector<8x32xbf16>
    %c0_1 = arith.constant 0 : index
    %c0_2 = arith.constant 0 : index
    %2 = vector.load %arg2[%c0_1, %c0_2] : memref<32x128xbf16, #tpu.memory_space<vmem>>, vector<32x128xbf16>
    %cst = arith.constant dense<0.000000e+00> : vector<8x128xf32>
    %3 = tpu.matmul %1, %2, %cst {dimension_numbers = #tpu.dot_dimension_numbers<[1], [0], [0], [1], [0, 0, 1, 1], [], []>} : vector<8x32xbf16>, vector<32x128xbf16>, vector<8x128xf32> -> vector<8x128xf32>
    %c0_3 = arith.constant 0 : index
    %c0_4 = arith.constant 0 : index
    %4 = vector.load %arg3[%c0_3, %c0_4] : memref<1x128xf32, #tpu.memory_space<vmem>>, vector<1x128xf32>
    %5 = vector.broadcast %4 : vector<1x128xf32> to vector<8x128xf32>
    %6 = arith.addf %3, %5 : vector<8x128xf32>
    %cst_5 = arith.constant 0.000000e+00 : f32
    %7 = vector.broadcast %cst_5 : f32 to vector<8x128xf32>
    %8 = arith.maximumf %6, %7 : vector<8x128xf32>
    %9 = arith.truncf %8 : vector<8x128xf32> to vector<8x128xbf16>
    %c0_6 = arith.constant 0 : index
    %c0_7 = arith.constant 0 : index
    %10 = vector.load %arg4[%c0_6, %c0_7] : memref<128x128xbf16, #tpu.memory_space<vmem>>, vector<128x128xbf16>
    %cst_8 = arith.constant dense<0.000000e+00> : vector<8x128xf32>
    %11 = tpu.matmul %9, %10, %cst_8 {dimension_numbers = #tpu.dot_dimension_numbers<[1], [0], [0], [1], [0, 0, 1, 1], [], []>} : vector<8x128xbf16>, vector<128x128xbf16>, vector<8x128xf32> -> vector<8x128xf32>
    %c0_9 = arith.constant 0 : index
    %c0_10 = arith.constant 0 : index
    %12 = vector.load %arg5[%c0_9, %c0_10] : memref<1x128xf32, #tpu.memory_space<vmem>>, vector<1x128xf32>
    %13 = vector.broadcast %12 : vector<1x128xf32> to vector<8x128xf32>
    %14 = arith.addf %11, %13 : vector<8x128xf32>
    %cst_11 = arith.constant 0.000000e+00 : f32
    %15 = vector.broadcast %cst_11 : f32 to vector<8x128xf32>
    %16 = arith.maximumf %14, %15 : vector<8x128xf32>
    %17 = arith.truncf %16 : vector<8x128xf32> to vector<8x128xbf16>
    %c0_12 = arith.constant 0 : index
    %c0_13 = arith.constant 0 : index
    %18 = vector.load %arg6[%c0_12, %c0_13] : memref<128x128xbf16, #tpu.memory_space<vmem>>, vector<128x128xbf16>
    %cst_14 = arith.constant dense<0.000000e+00> : vector<8x128xf32>
    %19 = tpu.matmul %17, %18, %cst_14 {dimension_numbers = #tpu.dot_dimension_numbers<[1], [0], [0], [1], [0, 0, 1, 1], [], []>} : vector<8x128xbf16>, vector<128x128xbf16>, vector<8x128xf32> -> vector<8x128xf32>
    %c0_15 = arith.constant 0 : index
    %c0_16 = arith.constant 0 : index
    %20 = vector.load %arg7[%c0_15, %c0_16] : memref<1x128xf32, #tpu.memory_space<vmem>>, vector<1x128xf32>
    %21 = vector.broadcast %20 : vector<1x128xf32> to vector<8x128xf32>
    %22 = arith.addf %19, %21 : vector<8x128xf32>
    %23 = math.tanh %22 : vector<8x128xf32>
    %c0_17 = arith.constant 0 : index
    %c0_18 = arith.constant 0 : index
    %24 = vector.load %arg8[%c0_17, %c0_18] : memref<8x128xf32, #tpu.memory_space<vmem>>, vector<8x128xf32>
    tpu.vector_store %arg8[%c0_17, %c0_18], %23 {strides = array<i32>} : memref<8x128xf32, #tpu.memory_space<vmem>>, vector<8x128xf32>,
    return
  }
  func.func @transform_0(%arg0: i32) -> (i32, i32) {
    %c0_i32 = arith.constant 0 : i32
    %c0_i32_0 = arith.constant 0 : i32
    return %arg0, %c0_i32 : i32, i32
  }
  func.func @transform_1(%arg0: i32) -> (i32, i32) {
    %c0_i32 = arith.constant 0 : i32
    %c0_i32_0 = arith.constant 0 : i32
    %c0_i32_1 = arith.constant 0 : i32
    return %c0_i32, %c0_i32_0 : i32, i32
  }
  func.func @transform_2(%arg0: i32) -> (i32, i32) {
    %c0_i32 = arith.constant 0 : i32
    %c0_i32_0 = arith.constant 0 : i32
    %c0_i32_1 = arith.constant 0 : i32
    return %c0_i32, %c0_i32_0 : i32, i32
  }
  func.func @transform_3(%arg0: i32) -> (i32, i32) {
    %c0_i32 = arith.constant 0 : i32
    %c0_i32_0 = arith.constant 0 : i32
    %c0_i32_1 = arith.constant 0 : i32
    return %c0_i32, %c0_i32_0 : i32, i32
  }
  func.func @transform_4(%arg0: i32) -> (i32, i32) {
    %c0_i32 = arith.constant 0 : i32
    %c0_i32_0 = arith.constant 0 : i32
    %c0_i32_1 = arith.constant 0 : i32
    return %c0_i32, %c0_i32_0 : i32, i32
  }
  func.func @transform_5(%arg0: i32) -> (i32, i32) {
    %c0_i32 = arith.constant 0 : i32
    %c0_i32_0 = arith.constant 0 : i32
    %c0_i32_1 = arith.constant 0 : i32
    return %c0_i32, %c0_i32_0 : i32, i32
  }
  func.func @transform_6(%arg0: i32) -> (i32, i32) {
    %c0_i32 = arith.constant 0 : i32
    %c0_i32_0 = arith.constant 0 : i32
    %c0_i32_1 = arith.constant 0 : i32
    return %c0_i32, %c0_i32_0 : i32, i32
  }
  func.func @transform_7(%arg0: i32) -> (i32, i32) {
    %c0_i32 = arith.constant 0 : i32
    %c0_i32_0 = arith.constant 0 : i32
    return %arg0, %c0_i32 : i32, i32
  }
}

</mosaic_0001>

<bundles_post_ra>
// kernel: tpu_custom_call.1
= control target key start
LH: loop header
LB: loop body
LE: loop exit
PB: predicated region body
PF: predicated region fallthrough
CT: control target
= control target key end

     0   :  { %12 = vsyncpa [#allocation3], 0  ;;  %s617_s0 = inlined_call_operand.hbm [shape: f32[8,32], index: 0, kind: input, shape index: {}]   ;;  %s618_s1 = inlined_call_operand.hbm [shape: bf16[32,128], index: 1, kind: input, shape index: {}]   ;;  %s619_s2 = inlined_call_operand.vmem [shape: f32[1,128], index: 2, kind: input, shape index: {}]   ;;  %s620_s3 = inlined_call_operand.hbm [shape: bf16[128,128], index: 3, kind: input, shape index: {}]   ;;  %s621_s4 = inlined_call_operand.vmem [shape: f32[1,128], index: 4, kind: input, shape index: {}]   ;;  %s622_s5 = inlined_call_operand.hbm [shape: bf16[128,128], index: 5, kind: input, shape index: {}]   ;;  %s623_s6 = inlined_call_operand.vmem [shape: f32[1,128], index: 6, kind: input, shape index: {}]   ;;  %s624_s7 = inlined_call_operand.hbm [shape: f32[8,128], index: 7, kind: output, shape index: {}]  }
   0x1   :  { %13 = vsyncpa [#allocation6], 0 }
   0x2   :  { %14 = vsyncpa [#allocation9], 0  ;;  %s31_s26 = sshll.u32 %s618_s1, 4  ;;  %s32_s26 = int_to_ptr.hbm [resolvable:$true] %s31_s26 }
   0x3   :  { %15 = vsyncpa [#allocation4], 0  ;;  %s546_s27 = smov [#allocation5]   ;;  %s21_s8 = sshll.u32 %s617_s0, 4  ;;  %s22_s8 = int_to_ptr.hbm [resolvable:$true] %s21_s8 }
   0x4   :  { %s33_s28 = sshll.u32 %s546_s27, 4  ;;  %s547_s9 = smov 64   ;;  %s34_s28 = int_to_ptr.vmem [resolvable:$true] %s33_s28 }
   0x5   :  { %s548_s10 = smov 4   ;;  %s549_s11 = smov [#allocation2]  }
   0x6   :  { %39 = dma.hbm_to_vmem [thread:$0]  %s32_s26, 256, %s34_s28, [#allocation6], %s547_s9, %s547_s9, %s548_s10  }
   0x7   :  { %s23_s12 = sshll.u32 %s549_s11, 4  ;;  %s46_s15 = sshll.u32 %s620_s3, 4  ;;  %s24_s12 = int_to_ptr.vmem [resolvable:$true] %s23_s12  ;;  %s47_s15 = int_to_ptr.hbm [resolvable:$true] %s46_s15 }
   0x8   :  { %26 = dma.hbm_to_vmem [thread:$0]  %s22_s8, 128, %s24_s12, [#allocation3]  }
   0x9   :  { %s61_s17 = sshll.u32 %s622_s5, 4  ;;  %s550_s18 = smov [#allocation7]   ;;  %s62_s17 = int_to_ptr.hbm [resolvable:$true] %s61_s17 }
   0xa   :  { %s48_s19 = sshll.u32 %s550_s18, 4  ;;  %s551_s0 = smov [#allocation8]   ;;  %s49_s19 = int_to_ptr.vmem [resolvable:$true] %s48_s19 }
   0xb   :  { %54 = dma.hbm_to_vmem [thread:$0]  %s47_s15, 1024, %s49_s19, [#allocation6], %s547_s9, %s547_s9, %s548_s10  }
   0xc   :  { %s63_s20 = sshll.u32 %s551_s0, 4  ;;  %s64_s20 = int_to_ptr.vmem [resolvable:$true] %s63_s20 }
   0xd   :  { %69 = dma.hbm_to_vmem [thread:$0]  %s62_s17, 1024, %s64_s20, [#allocation9], %s547_s9, %s547_s9, %s548_s10  }
   0xe   :  { %538 = dma.done.wait [#allocation3], 128  }
   0xf   :  { %539 = vsyncadd [#allocation3], 4294967168 }
  0x10   :  { %540 = dma.done.wait [#allocation6], 1280  }
  0x11   :  { %541 = vsyncadd [#allocation6], 4294966016 }
  0x12   :  { %542 = dma.done.wait [#allocation9], 1024  }
  0x13   :  { %543 = vsyncadd [#allocation9], 4294966272  ;;  %v389_v0 = vld [vmem:[#allocation5 + $0x8] sm:$0xff]  ;;  %v388_v2 = vld [vmem:[#allocation5] sm:$0xff]  ;;  %vm111_vm0 = vcmask 261120   ;;  %s552_s24 = smov [#allocation10]  }
  0x14   :  { %v397_v1 = vld [vmem:[#allocation7 + $0x38] sm:$0xff]  ;;  %121 = vmatpush.bf16.msra.mxu0 %v389_v0  ;;  %v89_v3 = vld [vmem:[#allocation2] sm:$0xff]  ;;  %v396_v4 = vld [vmem:[#allocation7 + $0x30] sm:$0xff]  ;;  %s301_s25 = sshll.u32 %s552_s24, 4  ;;  %s303_s28 = sshll.u32 %s624_s7, 4  ;;  %s302_s25 = int_to_ptr.vmem [resolvable:$true] %s301_s25  ;;  %s304_s28 = int_to_ptr.hbm [resolvable:$true] %s303_s28 }
  0x15   :  { %198 = vmatpush.bf16.msra.mxu1 %v397_v1  ;;  %v90_v5 = vpack.c.bf16 %v89_v3, %v89_v3  ;;  %v395_v6 = vld [vmem:[#allocation7 + $0x28] sm:$0xff]  ;;  %v394_v7 = vld [vmem:[#allocation7 + $0x20] sm:$0xff]  ;;  %v393_v8 = vld [vmem:[#allocation7 + $0x18] sm:$0xff] }
  0x16   :  { %v392_v9 = vld [vmem:[#allocation7 + $0x10] sm:$0xff]  ;;  %v391_v10 = vld [vmem:[#allocation7 + $0x8] sm:$0xff]  ;;  %v390_v11 = vld [vmem:[#allocation7] sm:$0xff] }
  0x17   :  { %v405_v12 = vld [vmem:[#allocation8 + $0x38] sm:$0xff]  ;;  %v404_v13 = vld [vmem:[#allocation8 + $0x30] sm:$0xff]  ;;  %v403_v14 = vld [vmem:[#allocation8 + $0x28] sm:$0xff] }
  0x18   :  { %122 = vmatpush.bf16.msra.mxu0 %v388_v2  ;;  %281 = vmatpush.bf16.msra.mxu2 %v405_v12  ;;  %v402_v15 = vld [vmem:[#allocation8 + $0x20] sm:$0xff]  ;;  %v401_v16 = vld [vmem:[#allocation8 + $0x18] sm:$0xff]  ;;  %v400_v17 = vld [vmem:[#allocation8 + $0x10] sm:$0xff] }
  0x19   :  { %199 = vmatpush.bf16.msra.mxu1 %v396_v4  ;;  %v413_v18 = vld [vmem:[%s619_s2] ss:$0 sm:$0xff]  ;;  %v398_v25 = vld [vmem:[#allocation8] sm:$0xff] }
  0x1a   :  { %v399_v24 = vld [vmem:[#allocation8 + $0x8] sm:$0xff] }
  0x1b   :  { %323 = vmatmul.msk.bf16.vlgmr.msra.gmra.mxu0 %vm111_vm0, %v90_v5  ;;  %v414_v26 = vld [vmem:[%s621_s4] ss:$0 sm:$0xff] }
  0x1c   :  { %282 = vmatpush.bf16.msra.mxu2 %v404_v13  ;;  %v415_v32 = vld [vmem:[%s623_s6] ss:$0 sm:$0xff] }
  0x1d   :  { %200 = vmatpush.bf16.msra.mxu1 %v395_v6 }
  0x20   :  { %283 = vmatpush.bf16.msra.mxu2 %v403_v14 }
  0x21   :  { %201 = vmatpush.bf16.msra.mxu1 %v394_v7 }
  0x24   :  { %284 = vmatpush.bf16.msra.mxu2 %v402_v15 }
  0x25   :  { %202 = vmatpush.bf16.msra.mxu1 %v393_v8 }
  0x28   :  { %285 = vmatpush.bf16.msra.mxu2 %v401_v16 }
  0x29   :  { %203 = vmatpush.bf16.msra.mxu1 %v392_v9 }
  0x2c   :  { %286 = vmatpush.bf16.msra.mxu2 %v400_v17 }
  0x2d   :  { %204 = vmatpush.bf16.msra.mxu1 %v391_v10 }
  0x30   :  { %287 = vmatpush.bf16.msra.mxu2 %v399_v24 }
  0x31   :  { %205 = vmatpush.bf16.msra.mxu1 %v390_v11 }
  0x34   :  { %288 = vmatpush.bf16.msra.mxu2 %v398_v25 }
  0x98   :  { %v124_v19 = vpop.f32.mrf.mxu0 }
  0x99   :  { %v125_v20 = vadd.f32 %v413_v18, %v124_v19 }
  0x9b   :  { %v128_v21 = vmax.f32 %v125_v20, 0.0 }
  0x9d   :  { %v129_v22 = vpack.c.bf16 %v128_v21, %v128_v21 }
  0x9f   :  { %206 = vmatmul.bf16.vlgmr.msra.gmra.mxu1 %v129_v22 }
  0xa0   :  { %v126_v23 = vpop.f32.mrf.mxu0 }
 0x11c   :  { %v207_v27 = vpop.f32.mrf.mxu1 }
 0x11d   :  { %v208_v28 = vadd.f32 %v414_v26, %v207_v27 }
 0x11f   :  { %v211_v29 = vmax.f32 %v208_v28, 0.0 }
 0x121   :  { %v212_v30 = vpack.c.bf16 %v211_v29, %v211_v29 }
 0x123   :  { %289 = vmatmul.bf16.vlgmr.msra.gmra.mxu2 %v212_v30 }
 0x124   :  { %v209_v31 = vpop.f32.mrf.mxu1 }
 0x1a6   :  { %v290_v33 = vpop.f32.mrf.mxu2 }
 0x1a7   :  { %v291_v34 = vadd.f32 %v415_v32, %v290_v33 }
 0x1a9   :  { %416 = vtanh.f32 %v291_v34 }
 0x1ae   :  { %v292_v35 = vpop.f32.mrf.mxu2 }
 0x1af   :  { %v417_v36 = vpop.eup %416 }
 0x1b0   :  { %295 = vst [vmem:[#allocation10] sm:$0xff] %v417_v36 }
 0x1b1   :  { %306 = dma.vmem_to_hbm [thread:$0]  %s302_s25, 128, %s304_s28, [#allocation4]  }
 0x1b2   :  { %544 = dma.done.wait [#allocation4], 128  }
 0x1b3   :  { %545 = vsyncadd [#allocation4], 4294967168 }
 0x1b4   :  { %311 = vsyncpa [#allocation3], 1 }
 0x1b5   :  { %312 = vsyncpa [#allocation6], 1 }
 0x1b6   :  { %313 = vsyncpa [#allocation9], 1 }
 0x1b7   :  { %314 = vsyncpa [#allocation4], 1 }

</bundles_post_ra>
